<compile_context>
chip_gen: v6e
topology: v6e:2x2x1
jax: 0.10.0
libtpu: 0.0.40
codegen_flags: <defaults>
</compile_context>

<pallas_src>
import functools

import jax
import jax.numpy as jnp
from jax import lax
from jax.experimental import pallas as pl
from jax.experimental.pallas import tpu as pltpu

_LANES = 128
_SUBLANES = 8


def _round_up(x, m):
    return -(-x // m) * m


# ------------------------------ Pallas kernels ------------------------------

def _charb_sum_kernel(d_ref, o_ref, acc_ref, *, n_blocks, steps, tr, rows,
                      need_row_mask, exact_cover):
    # d_ref : (tr, 128) tile of the (rows, 128) lane-dense view of diff
    # o_ref : (1, 1, 1) per-core partial-sum output (written on the core's
    #         last step only)
    # acc_ref: (8, 128) full-vreg VMEM accumulator, resident across the
    #          "arbitrary" grid axis.
    c = pl.program_id(0)
    i = pl.program_id(1)
    g = c * steps + i                       # global row-block index (unclamped)

    @pl.when(i == 0)
    def _init():
        acc_ref[...] = jnp.zeros_like(acc_ref)

    def _accumulate():
        d = d_ref[...].astype(jnp.float32)
        charb = jnp.sqrt(d * d + jnp.float32(1e-6))

        def _add(tile):
            # vreg-wise adds only; no per-step cross-sublane collapse
            acc_ref[...] += jnp.sum(tile.reshape(-1, _SUBLANES, _LANES), axis=0)

        if need_row_mask:
            is_last = g == n_blocks - 1

            @pl.when(is_last)
            def _ragged():                  # only the single ragged block pays
                row = lax.broadcasted_iota(jnp.int32, charb.shape, 0) + g * tr
                _add(jnp.where(row < rows, charb, jnp.float32(0.0)))

            @pl.when(jnp.logical_not(is_last))
            def _full():
                _add(charb)
        else:
            _add(charb)

    if exact_cover:
        _accumulate()
    else:
        # duplicated (clamped) blocks of the 2-core split contribute nothing
        pl.when(g < n_blocks)(_accumulate)

    @pl.when(i == steps - 1)
    def _finalize():
        s = jnp.sum(acc_ref[...], axis=0, keepdims=True)      # (1, 128)
        o_ref[0] = jnp.sum(s, axis=1, keepdims=True)          # (1, 1)


def _charb_masked_sum_kernel(d_ref, w_ref, onum_ref, oden_ref,
                             acc_n_ref, acc_d_ref, *, n_blocks, steps, tr, rows,
                             need_row_mask, exact_cover):
    c = pl.program_id(0)
    i = pl.program_id(1)
    g = c * steps + i

    @pl.when(i == 0)
    def _init():
        acc_n_ref[...] = jnp.zeros_like(acc_n_ref)
        acc_d_ref[...] = jnp.zeros_like(acc_d_ref)

    def _accumulate():
        d = d_ref[...].astype(jnp.float32)
        w = w_ref[...].astype(jnp.float32)
        cw = jnp.sqrt(d * d + jnp.float32(1e-6)) * w

        def _add(num_tile, den_tile):
            acc_n_ref[...] += jnp.sum(
                num_tile.reshape(-1, _SUBLANES, _LANES), axis=0)
            acc_d_ref[...] += jnp.sum(
                den_tile.reshape(-1, _SUBLANES, _LANES), axis=0)

        if need_row_mask:
            is_last = g == n_blocks - 1

            @pl.when(is_last)
            def _ragged():
                row = lax.broadcasted_iota(jnp.int32, cw.shape, 0) + g * tr
                keep = row < rows
                _add(jnp.where(keep, cw, jnp.float32(0.0)),
                     jnp.where(keep, w, jnp.float32(0.0)))

            @pl.when(jnp.logical_not(is_last))
            def _full():
                _add(cw, w)
        else:
            _add(cw, w)

    if exact_cover:
        _accumulate()
    else:
        pl.when(g < n_blocks)(_accumulate)

    @pl.when(i == steps - 1)
    def _finalize():
        sn = jnp.sum(acc_n_ref[...], axis=0, keepdims=True)
        onum_ref[0] = jnp.sum(sn, axis=1, keepdims=True)
        sd = jnp.sum(acc_d_ref[...], axis=0, keepdims=True)
        oden_ref[0] = jnp.sum(sd, axis=1, keepdims=True)


# --------------------------------- wrapper ----------------------------------

def charbonnier_l1(diff, mask=None, *, block_rows=4096, num_cores=2):
    """Charbonnier L1 loss; diff (and optional mask) can be any shape/dtype."""
    n = int(diff.size)
    if mask is not None:
        if mask.shape != diff.shape:
            mask = jnp.broadcast_to(mask, diff.shape)
        if mask.dtype == jnp.bool_:
            mask = mask.astype(jnp.float32)   # keep Mosaic loads simple

    flat = diff.reshape(-1)                   # bitcast, no HBM traffic
    pad = (-n) % _LANES
    if pad:
        # TODO(synk): non-lane-aligned sizes pay one pad-to-128 HBM copy here;
        # lane-aligned sizes (the common image case) are zero-copy.
        flat = jnp.pad(flat, (0, pad))
    rows = (n + pad) // _LANES
    d2 = flat.reshape(rows, _LANES)           # lane-dense view, bitcast

    block_rows = max(_SUBLANES, (block_rows // _SUBLANES) * _SUBLANES)
    tr = min(block_rows, _round_up(rows, _SUBLANES))
    n_blocks = -(-rows // tr)
    nc = max(1, min(num_cores, n_blocks))     # 2-TC split on v7x; no-op on 1-TC
    steps = -(-n_blocks // nc)
    exact_cover = (nc * steps == n_blocks)
    need_row_mask = (rows % tr) != 0          # only the last block is ragged

    if exact_cover:
        def dmap(c, i):
            return (c * steps + i, 0)
    else:
        def dmap(c, i):                       # clamp duplicated tail blocks
            return (jnp.minimum(c * steps + i, n_blocks - 1), 0)

    in_spec = pl.BlockSpec((tr, _LANES), dmap)
    out_spec = pl.BlockSpec((1, 1, 1), lambda c, i: (c, 0, 0))
    grid = (nc, steps)

    # VMEM budget: 2 pipeline buffers per input + headroom.  Only raise the
    # scoped limit when the default (16 MiB floor on v5e) would not fit.
    tile_bytes = tr * _LANES * jnp.dtype(diff.dtype).itemsize
    if mask is not None:
        tile_bytes += tr * _LANES * jnp.dtype(mask.dtype).itemsize
    needed = 2 * tile_bytes + (1 << 20)
    cparams = pltpu.CompilerParams(
        dimension_semantics=("parallel", "arbitrary"),
        vmem_limit_bytes=int(needed) if needed > (16 << 20) else None)

    common = dict(n_blocks=n_blocks, steps=steps, tr=tr, rows=rows,
                  need_row_mask=need_row_mask, exact_cover=exact_cover)

    if mask is None:
        kernel = functools.partial(_charb_sum_kernel, **common)
        partial = pl.pallas_call(
            kernel,
            out_shape=jax.ShapeDtypeStruct((nc, 1, 1), jnp.float32),
            grid=grid,
            in_specs=[in_spec],
            out_specs=out_spec,
            scratch_shapes=[pltpu.VMEM((_SUBLANES, _LANES), jnp.float32)],
            compiler_params=cparams,
        )(d2)
        total = jnp.sum(partial)
        if pad:
            # each explicit zero-pad element contributed exactly sqrt(1e-6)
            total = total - jnp.float32(pad) * jnp.sqrt(jnp.float32(1e-6))
        return total / jnp.float32(n)

    w = mask.reshape(-1)
    if pad:
        w = jnp.pad(w, (0, pad))              # zero weight on padded tail
    w2 = w.reshape(rows, _LANES)

    kernel = functools.partial(_charb_masked_sum_kernel, **common)
    num_p, den_p = pl.pallas_call(
        kernel,
        out_shape=(jax.ShapeDtypeStruct((nc, 1, 1), jnp.float32),
                   jax.ShapeDtypeStruct((nc, 1, 1), jnp.float32)),
        grid=grid,
        in_specs=[in_spec, in_spec],
        out_specs=(out_spec, out_spec),
        scratch_shapes=[pltpu.VMEM((_SUBLANES, _LANES), jnp.float32),
                        pltpu.VMEM((_SUBLANES, _LANES), jnp.float32)],
        compiler_params=cparams,
    )(d2, w2)
    num_mean = jnp.sum(num_p) / jnp.float32(n)
    den_mean = jnp.sum(den_p) / jnp.float32(n)
    return num_mean / (den_mean + jnp.float32(1e-9))


# ---------------------------- pure-JAX reference ----------------------------

def charbonnier_l1_ref(diff, mask=None):
    d = diff.astype(jnp.float32)
    charb = jnp.sqrt(d * d + 1e-6)
    if mask is None:
        return charb.mean()
    m = mask.astype(jnp.float32)
    return (charb * m).mean() / (m.mean() + 1e-9)


# ------------------------------------ main ----------------------------------

if __name__ == "__main__":
    key = jax.random.PRNGKey(0)
    ks = jax.random.split(key, 6)

    def check(got, want, atol=1e-5, rtol=1e-5):
        got = jax.block_until_ready(got)
        assert jnp.allclose(got, want, atol=atol, rtol=rtol), (got, want)

    # 1) lane-aligned image-like tensors (B, C, H, W) -> zero-copy wrapper path
    diff = jax.random.normal(ks[0], (2, 4, 16, 16), jnp.float32)
    mask = (jax.random.uniform(ks[1], (2, 4, 16, 16)) > 0.5).astype(jnp.float32)
    check(charbonnier_l1(diff), charbonnier_l1_ref(diff))
    check(charbonnier_l1(diff, mask), charbonnier_l1_ref(diff, mask))

    # 2) ragged element count (lane padding + last-block row mask)
    diff2 = jax.random.normal(ks[2], (3, 5, 7, 11), jnp.float32)
    mask2 = (jax.random.uniform(ks[3], (3, 5, 7, 11)) > 0.3).astype(jnp.float32)
    check(charbonnier_l1(diff2), charbonnier_l1_ref(diff2))
    check(charbonnier_l1(diff2, mask2), charbonnier_l1_ref(diff2, mask2))

    # 3) multi-block + 2-core split with odd block count (clamped/skipped blocks)
    diff3 = jax.random.normal(ks[4], (2, 3, 16, 32), jnp.float32)
    mask3 = (jax.random.uniform(ks[5], (2, 3, 16, 32)) > 0.5).astype(jnp.float32)
    check(charbonnier_l1(diff3, block_rows=8), charbonnier_l1_ref(diff3))
    check(charbonnier_l1(diff3, mask3, block_rows=8),
          charbonnier_l1_ref(diff3, mask3))

    # 4) multi-block + 2-core split, exact coverage
    check(charbonnier_l1(diff, block_rows=8), charbonnier_l1_ref(diff))

    # 5) native bf16 streaming (cast to f32 inside the kernel)
    diff_bf16 = diff.astype(jnp.bfloat16)
    check(charbonnier_l1(diff_bf16), charbonnier_l1_ref(diff_bf16))

    print("KERNEL_OK")
</pallas_src>

<mosaic_0001>
module attributes {stable_mosaic.version = 11 : i64} {
  func.func @_charb_sum_kernel(%arg0: i32, %arg1: i32, %arg2: memref<16x128xf32, #tpu.memory_space<vmem>>, %arg3: memref<1x1x1xf32, #tpu.memory_space<vmem>>, %arg4: memref<8x128xf32, #tpu.memory_space<vmem>>) attributes {dimension_semantics = [#tpu.dimension_semantics<parallel>, #tpu.dimension_semantics<arbitrary>], iteration_bounds = array<i64: 1, 1>, scalar_prefetch = 0 : i64, scratch_operands = 1 : i64, tpu.core_type = #tpu.core_type<tc>, window_params = [{transform_indices = @transform_0, window_bounds = array<i64: 16, 128>}, {transform_indices = @transform_1, window_bounds = array<i64: 1, 1, 1>}]} {
    %c0_i32 = arith.constant 0 : i32
    %0 = arith.cmpi eq, %arg1, %c0_i32 : i32
    %1 = arith.extui %0 : i1 to i32
    %c0_i32_0 = arith.constant 0 : i32
    %2 = arith.cmpi ne, %1, %c0_i32_0 : i32
    scf.if %2 {
      %cst_9 = arith.constant 0.000000e+00 : f32
      %16 = vector.broadcast %cst_9 : f32 to vector<8x128xf32>
      %c0_10 = arith.constant 0 : index
      %c0_11 = arith.constant 0 : index
      %17 = vector.load %arg4[%c0_10, %c0_11] : memref<8x128xf32, #tpu.memory_space<vmem>>, vector<8x128xf32>
      tpu.vector_store %arg4[%c0_10, %c0_11], %16 {strides = array<i32>} : memref<8x128xf32, #tpu.memory_space<vmem>>, vector<8x128xf32>,
    } else {
    }
    %c0 = arith.constant 0 : index
    %c0_1 = arith.constant 0 : index
    %3 = vector.load %arg2[%c0, %c0_1] : memref<16x128xf32, #tpu.memory_space<vmem>>, vector<16x128xf32>
    %4 = arith.mulf %3, %3 : vector<16x128xf32>
    %cst = arith.constant 9.99999997E-7 : f32
    %5 = vector.broadcast %cst : f32 to vector<16x128xf32>
    %6 = arith.addf %4, %5 : vector<16x128xf32>
    %7 = math.sqrt %6 : vector<16x128xf32>
    %c0_2 = arith.constant 0 : index
    %c0_3 = arith.constant 0 : index
    %8 = vector.load %arg4[%c0_2, %c0_3] : memref<8x128xf32, #tpu.memory_space<vmem>>, vector<8x128xf32>
    %9 = vector.shape_cast %7 : vector<16x128xf32> to vector<2x8x128xf32>
    %cst_4 = arith.constant dense<0.000000e+00> : vector<8x128xf32>
    %10 = vector.multi_reduction <add>, %9, %cst_4 [0] : vector<2x8x128xf32> to vector<8x128xf32>
    %11 = arith.addf %8, %10 : vector<8x128xf32>
    %c0_5 = arith.constant 0 : index
    %c0_6 = arith.constant 0 : index
    %12 = vector.load %arg4[%c0_5, %c0_6] : memref<8x128xf32, #tpu.memory_space<vmem>>, vector<8x128xf32>
    tpu.vector_store %arg4[%c0_5, %c0_6], %11 {strides = array<i32>} : memref<8x128xf32, #tpu.memory_space<vmem>>, vector<8x128xf32>,
    %c0_i32_7 = arith.constant 0 : i32
    %13 = arith.cmpi eq, %arg1, %c0_i32_7 : i32
    %14 = arith.extui %13 : i1 to i32
    %c0_i32_8 = arith.constant 0 : i32
    %15 = arith.cmpi ne, %14, %c0_i32_8 : i32
    scf.if %15 {
      %c0_9 = arith.constant 0 : index
      %c0_10 = arith.constant 0 : index
      %16 = vector.load %arg4[%c0_9, %c0_10] : memref<8x128xf32, #tpu.memory_space<vmem>>, vector<8x128xf32>
      %cst_11 = arith.constant dense<0.000000e+00> : vector<128xf32>
      %17 = vector.multi_reduction <add>, %16, %cst_11 [0] : vector<8x128xf32> to vector<128xf32>
      %18 = vector.shape_cast %17 : vector<128xf32> to vector<1x128xf32>
      %cst_12 = arith.constant dense<0.000000e+00> : vector<1xf32>
      %19 = vector.multi_reduction <add>, %18, %cst_12 [1] : vector<1x128xf32> to vector<1xf32>
      %20 = vector.shape_cast %19 : vector<1xf32> to vector<1x1xf32>
      %c0_13 = arith.constant 0 : index
      %c0_14 = arith.constant 0 : index
      %c0_15 = arith.constant 0 : index
      %21 = vector.load %arg3[%c0_13, %c0_14, %c0_15] : memref<1x1x1xf32, #tpu.memory_space<vmem>>, vector<1x1x1xf32>
      %22 = vector.shape_cast %21 : vector<1x1x1xf32> to vector<1x1xf32>
      %23 = vector.shape_cast %20 : vector<1x1xf32> to vector<1x1x1xf32>
      tpu.vector_store %arg3[%c0_13, %c0_14, %c0_15], %23 {strides = array<i32>} : memref<1x1x1xf32, #tpu.memory_space<vmem>>, vector<1x1x1xf32>,
    } else {
    }
    return
  }
  func.func @transform_0(%arg0: i32, %arg1: i32) -> (i32, i32) {
    %c1_i32 = arith.constant 1 : i32
    %0 = arith.muli %arg0, %c1_i32 : i32
    %1 = arith.addi %0, %arg1 : i32
    %c0_i32 = arith.constant 0 : i32
    %c0_i32_0 = arith.constant 0 : i32
    return %1, %c0_i32 : i32, i32
  }
  func.func @transform_1(%arg0: i32, %arg1: i32) -> (i32, i32, i32) {
    %c0_i32 = arith.constant 0 : i32
    %c0_i32_0 = arith.constant 0 : i32
    %c0_i32_1 = arith.constant 0 : i32
    return %arg0, %c0_i32, %c0_i32_0 : i32, i32, i32
  }
}

</mosaic_0001>

<bundles_post_ra>
// kernel: tpu_custom_call.1
= control target key start
LH: loop header
LB: loop body
LE: loop exit
PB: predicated region body
PF: predicated region fallthrough
CT: control target
= control target key end

     0   :  { %6 = vsyncpa [#allocation4], 0  ;;  %s159_s0 = inlined_call_operand.hbm [shape: f32[16,128], index: 0, kind: input, shape index: {}]   ;;  %s160_s1 = inlined_call_operand.hbm [shape: f32[1,1,1], index: 1, kind: output, shape index: {}]  }
   0x1   :  { %7 = vsyncpa [#allocation5], 0  ;;  %s139_s6 = smov [#allocation3]  }
   0x2   :  { %s17_s7 = sshll.u32 %s139_s6, 4  ;;  %s18_s7 = int_to_ptr.vmem [resolvable:$true] %s17_s7 }
   0x3   :  { %s103_s8 = scalar_lea.vmem %s18_s7, 256  ;;  %p108_p1 = scmp.lt.s32.totalorder %s18_s7, %s18_s7 }
   0x4   :  { %p104_p0 = scmp.ne.s32.totalorder %s18_s7, %s103_s8  ;;  %p109_p2 = scmp.lt.s32.totalorder %s103_s8, %s103_s8 }
   0x6   :  { %p110_p3 = por %p109_p2, %p108_p1 }
   0x8   :  { %p111_p4 = pnand %p110_p3, %p104_p0 }
   0xa   :  { %114 = shalt.err (!%p111_p4)
}
   0xb   :  { %s140_s9 = smov 128   ;;  %s141_s10 = smov 8  }
   0xc   :  { %23 = dma.hbm_to_vmem [thread:$0]  %s159_s0, 256, %s18_s7, [#allocation4], %s140_s9, %s140_s9, %s141_s10  }
   0xd   :  { %135 = dma.done.wait [#allocation4], 256  }
   0xe   :  { %136 = vsyncadd [#allocation4], 4294967040  ;;  %v34_v0 = vld [vmem:[#allocation3] sm:$0xff]  ;;  %v35_v1 = vld [vmem:[#allocation3 + $0x8] sm:$0xff]  ;;  %s142_s0 = smov [#allocation6]   ;;  %vm70_vm4 = vcmask 0  }
   0xf   :  { %v36_v2 = vmul.f32 %v34_v0, %v34_v0  ;;  %v37_v3 = vmul.f32 %v35_v1, %v35_v1  ;;  %s78_s13 = sshll.u32 %s142_s0, 4  ;;  %s79_s13 = int_to_ptr.vmem [resolvable:$true] %s78_s13 }
  0x10   :  { %s115_s14 = scalar_lea.vmem %s79_s13, 16  ;;  %s119_s15 = scalar_lea.vmem %s79_s13, 32 }
  0x11   :  { %v38_v4 = vadd.f32 1e-06, %v36_v2  ;;  %v39_v5 = vadd.f32 1e-06, %v37_v3  ;;  %p116_p5 = scmp.ne.s32.totalorder %s79_s13, %s115_s14  ;;  %p120_p6 = scmp.lt.s32.totalorder %s79_s13, %s79_s13 }
  0x12   :  { %p121_p7 = scmp.lt.s32.totalorder %s119_s15, %s115_s14 }
  0x13   :  { %91 = vrsqrt.f32 %v38_v4  ;;  %vm42_vm0 = vcmp.eq.f32.partialorder %v38_v4, inf  ;;  %v45_v7 = vand.u32 2147483648, %v38_v4  ;;  %vm44_vm1 = vcmp.eq.f32.partialorder %v38_v4, 0.0 }
  0x14   :  { %93 = vrsqrt.f32 %v39_v5  ;;  %vm49_vm2 = vcmp.eq.f32.partialorder %v39_v5, inf  ;;  %v52_v10 = vand.u32 2147483648, %v39_v5  ;;  %vm51_vm3 = vcmp.eq.f32.partialorder %v39_v5, 0.0  ;;  %p122_p8 = por %p121_p7, %p120_p6 }
  0x16   :  { %p123_p9 = pnand %p122_p8, %p116_p5 }
  0x20   :  { %v92_v6 = vpop.eup %91 }
  0x21   :  { %v94_v8 = vpop.eup %93  ;;  %v41_v9 = vmul.f32 %v92_v6, %v38_v4 }
  0x22   :  { %v48_v11 = vmul.f32 %v94_v8, %v39_v5 }
  0x23   :  { %v43_v12 = vsel %vm42_vm0, %v38_v4, %v41_v9 }
  0x24   :  { %v46_v13 = vsel %vm44_vm1, %v45_v7, %v43_v12  ;;  %v50_v14 = vsel %vm49_vm2, %v39_v5, %v48_v11 }
  0x25   :  { %v53_v15 = vsel %vm51_vm3, %v52_v10, %v50_v14 }
  0x26   :  { %v55_v16 = vadd.f32 %v53_v15, %v46_v13 }
  0x28   :  { %v62_v17 = vrot.slane %v55_v16, 4 }
  0x2a   :  { %v63_v18 = vadd.f32 %v62_v17, %v55_v16 }
  0x2c   :  { %v64_v19 = vrot.slane %v63_v18, 2 }
  0x2e   :  { %v65_v20 = vadd.f32 %v64_v19, %v63_v18 }
  0x30   :  { %v66_v21 = vrot.slane %v65_v20, 1 }
  0x32   :  { %v67_v22 = vadd.f32 %v66_v21, %v65_v20 }
  0x34   :  { %68 = vadd.xlane.f32.xlu0 %v67_v22 }
  0xbd   :  { %v69_v23 = vpop.xlane.xlu0 %68 }
  0xbe   :  { %71 = vst.msk [vmem:[#allocation6] sm:$0x1] %vm70_vm4, %v69_v23 }
  0xbf   :  { %126 = shalt.err (!%p123_p9)
}
  0xc0   :  { %81 = dma.vmem_to_hbm [thread:$0]  %s79_s13, 16, %s160_s1, [#allocation5]  }
  0xc1   :  { %137 = dma.done.wait [#allocation5], 16  }
  0xc2   :  { %138 = vsyncadd [#allocation5], 4294967280 }
  0xc3   :  { %85 = vsyncpa [#allocation4], 1 }
  0xc4   :  { %86 = vsyncpa [#allocation5], 1 }

</bundles_post_ra>
